<compile_context>
chip_gen: v7x
topology: tpu7x:2x2x1
jax: 0.10.0
libtpu: 0.0.40
codegen_flags: <defaults>
</compile_context>

<pallas_src>
import math

import jax
import jax.numpy as jnp
from jax.experimental import pallas as pl
from jax.experimental.pallas import tpu as pltpu

GROUP = 8  # batch rows packed per 128-lane row (8 * n_o = 128 for n_o = 16)


def mlp_kernel(x_ref, w0_ref, b0_ref, w1_ref, b1_ref, w2_ref, b2_ref, o_ref):
    # Packed shapes (tr = packed rows per tile; each packed row = GROUP batch rows):
    #   x_ref : (tr, GROUP)            f32
    #   w0    : (GROUP, GROUP*h0)      bf16  (block-diag of W0^T)
    #   b0    : (1, GROUP*h0)          f32   (b0 tiled GROUP times)
    #   w1    : (GROUP*h0, GROUP*h1)   bf16  (block-diag of W1^T)
    #   b1    : (1, GROUP*h1)          f32
    #   w2    : (GROUP*h1, GROUP*n_o)  bf16  (block-diag of W2^T)
    #   b2    : (1, GROUP*n_o)         f32
    #   o_ref : (tr, GROUP*n_o)        f32   (lane-dense: GROUP*n_o = 128)
    # Each layer: weight-stationary MXU matmul (bf16 in, f32 accumulate);
    # bias + ReLU stay f32 on the VPU.
    x = x_ref[...].astype(jnp.bfloat16)

    h = jnp.dot(x, w0_ref[...], preferred_element_type=jnp.float32)
    h = jnp.maximum(h + b0_ref[...], 0.0)

    h = jnp.dot(h.astype(jnp.bfloat16), w1_ref[...],
                preferred_element_type=jnp.float32)
    h = jnp.maximum(h + b1_ref[...], 0.0)

    out = jnp.dot(h.astype(jnp.bfloat16), w2_ref[...],
                  preferred_element_type=jnp.float32) + b2_ref[...]
    o_ref[...] = out.astype(o_ref.dtype)


def _round_up(v, m):
    return ((v + m - 1) // m) * m


def _choose_packed_tile(n_pack, tr_max):
    """Packed-row tile size: multiple of 8, <= tr_max, >= 2 grid steps when
    possible, preferring an even step count (v7x has two TensorCores)."""
    tr_max = max(8, (int(tr_max) // 8) * 8)
    if n_pack <= 8:
        return 8
    tr = max(8, min(tr_max, _round_up((n_pack + 1) // 2, 8)))  # >= 2 steps
    steps = -(-n_pack // tr)
    if steps > 1 and steps % 2 == 1:
        cand = max(8, _round_up(-(-n_pack // (steps + 1)), 8))
        if -(-n_pack // cand) % 2 == 0:
            tr = cand
    return tr


def pack_params(params):
    """Pack PyTorch-layout params (W:(out,in), b:(out,1)) into GROUP-way
    block-diagonal bf16 weights and GROUP-tiled f32 biases for the kernel."""
    packed = []
    eye = jnp.eye(GROUP, dtype=jnp.float32)
    for w, b in params:
        wt = w.astype(jnp.float32).T                      # (in, out)
        wp = jnp.kron(eye, wt).astype(jnp.bfloat16)       # (G*in, G*out) block-diag
        bp = jnp.tile(b[:, 0].astype(jnp.float32), GROUP)[None, :]  # (1, G*out)
        packed.append((wp, bp))
    return packed


def local_embedding_forward(x, params, *, tm=16384):
    """x: (..., 1) float32.  params: list of (W, b), W in PyTorch (out, in)
    layout, b of shape (out, 1).  Returns (..., n_o) float32."""
    (w0, b0), (w1, b1), (w2, b2) = params
    assert x.shape[-1] == 1
    lead_shape = x.shape[:-1]
    n = math.prod(lead_shape) if lead_shape else 1
    n_o = w2.shape[0]
    h0, h1 = w0.shape[0], w1.shape[0]

    (w0p, b0p), (w1p, b1p), (w2p, b2p) = pack_params(params)

    # Pack GROUP batch rows per lane-row.  When n is a multiple of GROUP (the
    # common case) every reshape below is a free contiguous view.
    n8 = max(_round_up(n, GROUP), GROUP * 8)
    x_flat = x.reshape(n).astype(jnp.float32)
    if n8 != n:
        # TODO(synk): ragged-N path pays one tiny pad/slice copy; main path is copy-free.
        x_flat = jnp.pad(x_flat, (0, n8 - n))
    n_pack = n8 // GROUP
    xp = x_flat.reshape(n_pack, GROUP)

    tr = _choose_packed_tile(n_pack, max(GROUP, int(tm)) // GROUP)
    grid = (pl.cdiv(n_pack, tr),)

    cost = pl.CostEstimate(
        flops=2 * n * (h0 * 1 + h1 * h0 + n_o * h1),
        transcendentals=0,
        bytes_accessed=4 * n * (1 + n_o)
        + 2 * (w0p.size + w1p.size + w2p.size)
        + 4 * (b0p.size + b1p.size + b2p.size),
    )

    full = lambda i: (0, 0)  # weights / biases: single resident block
    out_packed = pl.pallas_call(
        mlp_kernel,
        out_shape=jax.ShapeDtypeStruct((n_pack, GROUP * n_o), jnp.float32),
        grid_spec=pltpu.PrefetchScalarGridSpec(
            num_scalar_prefetch=0,
            grid=grid,
            in_specs=[
                pl.BlockSpec((tr, GROUP), lambda i: (i, 0)),   # packed x tile
                pl.BlockSpec(w0p.shape, full),
                pl.BlockSpec(b0p.shape, full),
                pl.BlockSpec(w1p.shape, full),
                pl.BlockSpec(b1p.shape, full),
                pl.BlockSpec(w2p.shape, full),
                pl.BlockSpec(b2p.shape, full),
            ],
            out_specs=pl.BlockSpec((tr, GROUP * n_o), lambda i: (i, 0)),
        ),
        compiler_params=pltpu.CompilerParams(
            dimension_semantics=("parallel",)),
        cost_estimate=cost,
    )(xp, w0p, b0p, w1p, b1p, w2p, b2p)

    # (n_pack, GROUP*n_o) -> (n8, n_o) is a free contiguous view: row r,
    # lane g*n_o + c is exactly batch row r*GROUP + g, channel c.
    out = out_packed.reshape(n8, n_o)
    if n8 != n:
        out = out[:n]
    return out.reshape(*lead_shape, n_o)


def init_params(key, n_o, n_h):
    """Deterministic init matching nn.Linear shapes: W (out, in), b (out, 1)."""
    n_list = [1, *n_h, n_o]
    params = []
    for i in range(len(n_list) - 1):
        fan_in, fan_out = n_list[i], n_list[i + 1]
        key, kw, kb = jax.random.split(key, 3)
        bound = 1.0 / math.sqrt(fan_in)
        w = jax.random.uniform(kw, (fan_out, fan_in), jnp.float32,
                               minval=-bound, maxval=bound)
        b = jax.random.uniform(kb, (fan_out, 1), jnp.float32,
                               minval=-bound, maxval=bound)
        params.append((w, b))
    return params


def reference_forward(x, params):
    # Pure-JAX f32 reference with PyTorch Linear semantics: y = x @ W^T + b.
    h = x
    for i, (w, b) in enumerate(params):
        h = h @ w.T + b[:, 0]
        if i != len(params) - 1:
            h = jnp.maximum(h, 0.0)
    return h


if __name__ == "__main__":
    n_h = [32, 32]
    n_o = 16

    key = jax.random.PRNGKey(0)
    kx, kp = jax.random.split(key)

    # Input: (batch=2, points=64, feature=1) -> forward gives (2, 64, n_o)
    x = jax.random.normal(kx, (2, 64, 1), dtype=jnp.float32)
    params = init_params(kp, n_o, n_h)

    out = local_embedding_forward(x, params)
    out = jax.block_until_ready(out)

    ref = reference_forward(x, params)
    assert out.shape == (2, 64, n_o)
    # bf16 MXU inputs with f32 accumulation -> slightly looser tolerance.
    assert jnp.allclose(out, ref, atol=5e-2, rtol=5e-2)

    print("KERNEL_OK")
</pallas_src>

<mosaic_0001>
module attributes {stable_mosaic.version = 11 : i64} {
  func.func @mlp_kernel(%arg0: i32, %arg1: memref<8x8xf32, #tpu.memory_space<vmem>>, %arg2: memref<8x256xbf16, #tpu.memory_space<vmem>>, %arg3: memref<1x256xf32, #tpu.memory_space<vmem>>, %arg4: memref<256x256xbf16, #tpu.memory_space<vmem>>, %arg5: memref<1x256xf32, #tpu.memory_space<vmem>>, %arg6: memref<256x128xbf16, #tpu.memory_space<vmem>>, %arg7: memref<1x128xf32, #tpu.memory_space<vmem>>, %arg8: memref<8x128xf32, #tpu.memory_space<vmem>>) attributes {dimension_semantics = [#tpu.dimension_semantics<parallel>], iteration_bounds = array<i64: 2>, scalar_prefetch = 0 : i64, scratch_operands = 0 : i64, tpu.core_type = #tpu.core_type<tc>, window_params = [{transform_indices = @transform_0, window_bounds = array<i64: 8, 8>}, {pipeline_mode = #tpu.pipeline_mode<synchronous>, transform_indices = @transform_1, window_bounds = array<i64: 8, 256>}, {pipeline_mode = #tpu.pipeline_mode<synchronous>, transform_indices = @transform_2, window_bounds = array<i64: 1, 256>}, {pipeline_mode = #tpu.pipeline_mode<synchronous>, transform_indices = @transform_3, window_bounds = array<i64: 256, 256>}, {pipeline_mode = #tpu.pipeline_mode<synchronous>, transform_indices = @transform_4, window_bounds = array<i64: 1, 256>}, {pipeline_mode = #tpu.pipeline_mode<synchronous>, transform_indices = @transform_5, window_bounds = array<i64: 256, 128>}, {pipeline_mode = #tpu.pipeline_mode<synchronous>, transform_indices = @transform_6, window_bounds = array<i64: 1, 128>}, {transform_indices = @transform_7, window_bounds = array<i64: 8, 128>}]} {
    %c0 = arith.constant 0 : index
    %c0_0 = arith.constant 0 : index
    %0 = vector.load %arg1[%c0, %c0_0] : memref<8x8xf32, #tpu.memory_space<vmem>>, vector<8x8xf32>
    %1 = arith.truncf %0 : vector<8x8xf32> to vector<8x8xbf16>
    %c0_1 = arith.constant 0 : index
    %c0_2 = arith.constant 0 : index
    %2 = vector.load %arg2[%c0_1, %c0_2] : memref<8x256xbf16, #tpu.memory_space<vmem>>, vector<8x256xbf16>
    %cst = arith.constant dense<0.000000e+00> : vector<8x256xf32>
    %3 = tpu.matmul %1, %2, %cst {dimension_numbers = #tpu.dot_dimension_numbers<[1], [0], [0], [1], [0, 0, 1, 1], [], []>} : vector<8x8xbf16>, vector<8x256xbf16>, vector<8x256xf32> -> vector<8x256xf32>
    %c0_3 = arith.constant 0 : index
    %c0_4 = arith.constant 0 : index
    %4 = vector.load %arg3[%c0_3, %c0_4] : memref<1x256xf32, #tpu.memory_space<vmem>>, vector<1x256xf32>
    %5 = vector.broadcast %4 : vector<1x256xf32> to vector<8x256xf32>
    %6 = arith.addf %3, %5 : vector<8x256xf32>
    %cst_5 = arith.constant 0.000000e+00 : f32
    %7 = vector.broadcast %cst_5 : f32 to vector<8x256xf32>
    %8 = arith.maximumf %6, %7 : vector<8x256xf32>
    %9 = arith.truncf %8 : vector<8x256xf32> to vector<8x256xbf16>
    %c0_6 = arith.constant 0 : index
    %c0_7 = arith.constant 0 : index
    %10 = vector.load %arg4[%c0_6, %c0_7] : memref<256x256xbf16, #tpu.memory_space<vmem>>, vector<256x256xbf16>
    %cst_8 = arith.constant dense<0.000000e+00> : vector<8x256xf32>
    %11 = tpu.matmul %9, %10, %cst_8 {dimension_numbers = #tpu.dot_dimension_numbers<[1], [0], [0], [1], [0, 0, 1, 1], [], []>} : vector<8x256xbf16>, vector<256x256xbf16>, vector<8x256xf32> -> vector<8x256xf32>
    %c0_9 = arith.constant 0 : index
    %c0_10 = arith.constant 0 : index
    %12 = vector.load %arg5[%c0_9, %c0_10] : memref<1x256xf32, #tpu.memory_space<vmem>>, vector<1x256xf32>
    %13 = vector.broadcast %12 : vector<1x256xf32> to vector<8x256xf32>
    %14 = arith.addf %11, %13 : vector<8x256xf32>
    %cst_11 = arith.constant 0.000000e+00 : f32
    %15 = vector.broadcast %cst_11 : f32 to vector<8x256xf32>
    %16 = arith.maximumf %14, %15 : vector<8x256xf32>
    %17 = arith.truncf %16 : vector<8x256xf32> to vector<8x256xbf16>
    %c0_12 = arith.constant 0 : index
    %c0_13 = arith.constant 0 : index
    %18 = vector.load %arg6[%c0_12, %c0_13] : memref<256x128xbf16, #tpu.memory_space<vmem>>, vector<256x128xbf16>
    %cst_14 = arith.constant dense<0.000000e+00> : vector<8x128xf32>
    %19 = tpu.matmul %17, %18, %cst_14 {dimension_numbers = #tpu.dot_dimension_numbers<[1], [0], [0], [1], [0, 0, 1, 1], [], []>} : vector<8x256xbf16>, vector<256x128xbf16>, vector<8x128xf32> -> vector<8x128xf32>
    %c0_15 = arith.constant 0 : index
    %c0_16 = arith.constant 0 : index
    %20 = vector.load %arg7[%c0_15, %c0_16] : memref<1x128xf32, #tpu.memory_space<vmem>>, vector<1x128xf32>
    %21 = vector.broadcast %20 : vector<1x128xf32> to vector<8x128xf32>
    %22 = arith.addf %19, %21 : vector<8x128xf32>
    %c0_17 = arith.constant 0 : index
    %c0_18 = arith.constant 0 : index
    %23 = vector.load %arg8[%c0_17, %c0_18] : memref<8x128xf32, #tpu.memory_space<vmem>>, vector<8x128xf32>
    tpu.vector_store %arg8[%c0_17, %c0_18], %22 {strides = array<i32>} : memref<8x128xf32, #tpu.memory_space<vmem>>, vector<8x128xf32>,
    return
  }
  func.func @transform_0(%arg0: i32) -> (i32, i32) {
    %c0_i32 = arith.constant 0 : i32
    %c0_i32_0 = arith.constant 0 : i32
    return %arg0, %c0_i32 : i32, i32
  }
  func.func @transform_1(%arg0: i32) -> (i32, i32) {
    %c0_i32 = arith.constant 0 : i32
    %c0_i32_0 = arith.constant 0 : i32
    %c0_i32_1 = arith.constant 0 : i32
    return %c0_i32, %c0_i32_0 : i32, i32
  }
  func.func @transform_2(%arg0: i32) -> (i32, i32) {
    %c0_i32 = arith.constant 0 : i32
    %c0_i32_0 = arith.constant 0 : i32
    %c0_i32_1 = arith.constant 0 : i32
    return %c0_i32, %c0_i32_0 : i32, i32
  }
  func.func @transform_3(%arg0: i32) -> (i32, i32) {
    %c0_i32 = arith.constant 0 : i32
    %c0_i32_0 = arith.constant 0 : i32
    %c0_i32_1 = arith.constant 0 : i32
    return %c0_i32, %c0_i32_0 : i32, i32
  }
  func.func @transform_4(%arg0: i32) -> (i32, i32) {
    %c0_i32 = arith.constant 0 : i32
    %c0_i32_0 = arith.constant 0 : i32
    %c0_i32_1 = arith.constant 0 : i32
    return %c0_i32, %c0_i32_0 : i32, i32
  }
  func.func @transform_5(%arg0: i32) -> (i32, i32) {
    %c0_i32 = arith.constant 0 : i32
    %c0_i32_0 = arith.constant 0 : i32
    %c0_i32_1 = arith.constant 0 : i32
    return %c0_i32, %c0_i32_0 : i32, i32
  }
  func.func @transform_6(%arg0: i32) -> (i32, i32) {
    %c0_i32 = arith.constant 0 : i32
    %c0_i32_0 = arith.constant 0 : i32
    %c0_i32_1 = arith.constant 0 : i32
    return %c0_i32, %c0_i32_0 : i32, i32
  }
  func.func @transform_7(%arg0: i32) -> (i32, i32) {
    %c0_i32 = arith.constant 0 : i32
    %c0_i32_0 = arith.constant 0 : i32
    return %arg0, %c0_i32 : i32, i32
  }
}

</mosaic_0001>

<bundles_post_ra>
// kernel: tpu_custom_call.1
= control target key start
LH: loop header
LB: loop body
LE: loop exit
PB: predicated region body
PF: predicated region fallthrough
CT: control target
= control target key end

     0   :  { %12 = vsyncpa [#allocation3], 0  ;;  %s1481_s0 = inlined_call_operand.vmem [shape: f32[16,8], index: 0, kind: input, shape index: {}]   ;;  %s1482_s1 = inlined_call_operand.vmem [shape: bf16[8,256], index: 1, kind: input, shape index: {}]   ;;  %s1483_s2 = inlined_call_operand.vmem [shape: f32[1,256], index: 2, kind: input, shape index: {}]   ;;  %s1484_s3 = inlined_call_operand.hbm [shape: bf16[256,256], index: 3, kind: input, shape index: {}]   ;;  %s1485_s4 = inlined_call_operand.vmem [shape: f32[1,256], index: 4, kind: input, shape index: {}]   ;;  %s1486_s5 = inlined_call_operand.hbm [shape: bf16[256,128], index: 5, kind: input, shape index: {}]   ;;  %s1487_s6 = inlined_call_operand.vmem [shape: f32[1,128], index: 6, kind: input, shape index: {}]   ;;  %s1488_s7 = inlined_call_operand.hbm [shape: f32[16,128], index: 7, kind: output, shape index: {}]  }
   0x1   :  { %13 = vsyncpa [#allocation6], 0 }
   0x2   :  { %14 = vsyncpa [#allocation4], 0 }
   0x3   :  { %16 = vsyncpa [#allocation4 + $0x1], 0  ;;  %s1297_s24 = smov 0   ;;  %s1299_s25 = smov 0  }
   0x4   :  { %s1301_s26 = smov 0   ;;  %s1303_s27 = smov 0  }
   0x5 LB: > { %s1318_s28 = sadd.s32 4294967295, %s1247_s27   ;;  %s901_s29 = sadd.s32 4294967294, %s1247_s27   ;;  %s1247_s27 = sphi %s1303_s27, %s1508_s27   ;;  %s1243_s26 = sphi %s1301_s26, %s1507_s26   ;;  %s1239_s25 = sphi %s1299_s25, %s1506_s25   ;;  %s1235_s24 = sphi %s1297_s24, %s1505_s24  }
   0x6   : > { %s1322_s30 = sadd.s32 1, %s1247_s27   ;;  %s181_s8 = sadd.s32 1, %s1243_s26 }
   0x7   : > { %s178_s9 = ssub.s32 %s1247_s27, %s1322_s30  ;;  %p191_p0 = scmp.ne.s32.totalorder %s1243_s26, %s1239_s25 }
   0x8   : > { %p179_p1 = scmp.eq.s32.totalorder %s178_s9, 0  ;;  %p192_p2 = scmp.eq.s32.totalorder %s1318_s28, 1 }
   0x9   : > { %p197_p3 = scmp.ne.s32.totalorder %s1239_s25, %s1235_s24  ;;  %p198_p4 = scmp.eq.s32.totalorder %s901_s29, 1 }
   0xa   : > { %s1333_s10 = scalar_select %p179_p1, %s1243_s26, %s181_s8  }
   0xb   : > { %p1335_p5 = por %p192_p2, %p191_p0  ;;  %p1339_p6 = por %p198_p4, %p197_p3 }
   0xc   : > { %1492 = sst [smem:[#allocation11_spill]] %s1333_s10  ;;  %p902_p7 = scmp.ge.s32.totalorder %s1247_s27, 1 }
   0xd   : > { %s1493_s11 = scalar_select %p1335_p5, 1, 0 }
   0xe   : > { %s1494_s12 = scalar_select %p1339_p6, 1, 0 }
   0xf   : > { %p205_p8 = scmp.lt.s32.totalorder %s1247_s27, 3  ;;  %p1489_p9 = scmp.eq.s32.totalorder %s1318_s28, 0 }
  0x10   : > { %s1249_s14 = smov [#allocation2]   ;;  %s1250_s17 = smov [#allocation5]  }
  0x11   : > { %p1346_p10 = pnand %p902_p7, %p205_p8  ;;  %s223_s15 = sshll.u32 %s1249_s14, 4  ;;  %s224_s15 = int_to_ptr.vmem [resolvable:$true] %s223_s15 }
  0x12   : > { %s239_s18 = sshll.u32 %s1250_s17, 4  ;;  %s1121_s21 = scalar_lea.hbm %s1484_s3, 4096  ;;  %s1358_s18 = int_to_ptr.vmem [resolvable:$true] %s239_s18 }
  0x13   : > { %s1495_s13 = scalar_select %p1346_p10, 1, 0 }
  0x14   : > { %p1000_p11 = pneg %p1346_p10  ;;  %p1122_p13 = scmp.ne.s32.totalorder %s1484_s3, %s1121_s21 }
  0x15   : > { %p1128_p3 = scmp.lt.u32.totalorder %s1121_s21, %s1484_s3 }
  0x16   : > { %p1354_p12 = pnand %p1489_p9, %p1000_p11 }
  0x18   : > { %p1123_p0 = pneg %p1354_p12 }
  0x1a   : > { %p1124_p1 = pnand %p1123_p0, %p1122_p13 }
  0x1c   : > { %p1125_p2 = pneg %p1124_p1 }
  0x1e   : > { %p1130_p4 = pnand %p1128_p3, %p1125_p2 }
  0x20   : > { %1133 = shalt.err (!%p1130_p4)
}
  0x21   : > { %s1134_s9 = scalar_lea.vmem %s224_s15, 4096  ;;  %p1142_p9 = scmp.lt.s32.totalorder %s224_s15, %s224_s15 }
  0x22   : > { %p1135_p7 = scmp.ne.s32.totalorder %s224_s15, %s1134_s9  ;;  %p1143_p6 = scmp.lt.s32.totalorder %s1134_s9, %s1134_s9 }
  0x24   : > { %p1137_p8 = pnand %p1135_p7, %p1123_p0  ;;  %p1144_p5 = por %p1143_p6, %p1142_p9 }
  0x26   : > { %p1138_p11 = pneg %p1137_p8 }
  0x28   : > { %p1145_p10 = pnand %p1144_p5, %p1138_p11 }
  0x2a   : > { %1148 = shalt.err (!%p1145_p10)
}
  0x2b   : > { %s1251_s14 = smov 128   ;;  %s1252_s17 = smov 8  }
  0x2c   : > { %1003 = dma.hbm_to_vmem [thread:$0]  (!%p1354_p12), %s1484_s3, 4096, %s224_s15, [#allocation3], %s1251_s14, %s1251_s14, %s1252_s17  }
  0x2d   : > { %s1149_s23 = scalar_lea.hbm %s1486_s5, 2048 }
  0x2e   : > { %p1150_p13 = scmp.ne.s32.totalorder %s1486_s5, %s1149_s23  ;;  %p1156_p9 = scmp.lt.u32.totalorder %s1149_s23, %s1486_s5 }
  0x30   : > { %p1152_p5 = pnand %p1150_p13, %p1123_p0 }
  0x32   : > { %p1153_p6 = pneg %p1152_p5 }
  0x34   : > { %p1158_p10 = pnand %p1156_p9, %p1153_p6 }
  0x36   : > { %1161 = shalt.err (!%p1158_p10)
}
  0x37   : > { %s1162_s15 = scalar_lea.vmem %s1358_s18, 2048  ;;  %p1170_p4 = scmp.lt.s32.totalorder %s1358_s18, %s1358_s18 }
  0x38   : > { %p1163_p1 = scmp.ne.s32.totalorder %s1358_s18, %s1162_s15  ;;  %p1171_p7 = scmp.lt.s32.totalorder %s1162_s15, %s1162_s15 }
  0x3a   : > { %p1165_p2 = pnand %p1163_p1, %p1123_p0  ;;  %p1172_p8 = por %p1171_p7, %p1170_p4 }
  0x3c   : > { %p1166_p3 = pneg %p1165_p2 }
  0x3e   : > { %p1173_p11 = pnand %p1172_p8, %p1166_p3 }
  0x40   : > { %1176 = shalt.err (!%p1173_p11)
}
  0x41   : > { %s1253_s10 = smov 64   ;;  %s1254_s14 = smov 4  }
  0x42   : > { %1006 = dma.hbm_to_vmem [thread:$0]  (!%p1354_p12), %s1486_s5, 2048, %s1358_s18, [#allocation6], %s1253_s10, %s1253_s10, %s1254_s14  }
  0x43   : > { %p1497_p13 = scmp.ne.s32.totalorder %s1495_s13, 0 }
  0x44   : > { %p1498_p0 = scmp.eq.s32.totalorder (!%p1497_p13), %s1318_s28, 0 }
  0x45   : > { %265 = sbr.rel (%p1497_p13) target bundleno = 760 (0x2f8), region = 48 }
  0x4c   : > { %1222 = dma.done.wait (%p1498_p0), [#allocation3], 4096   ;;  %p1499_p5 = pmov %p1498_p0 }
  0x4d   : > { %p1500_p6 = pmov %p1498_p0 }
  0x4e   : > { %1224 = vsyncadd (%p1499_p5), [#allocation3], 4294963200 }
  0x4f   : > { %1226 = dma.done.wait (%p1500_p6), [#allocation6], 2048   ;;  %p1501_p9 = pmov %p1498_p0 }
  0x50   : > { %p300_p10 = scmp.lt.s32.totalorder %s1318_s28, 1  ;;  %v1255_v0 = vmov 0   ;;  %v307_v1 = vld [vmem:[%s1482_s1] sm:$0xff]  ;;  %vm329_vm0 = vcmask 1043456   ;;  %v1060_v7 = vld [vmem:[#allocation2 + $0x14] ss:$8 sps:$4 sm:$0xff]   ;;  %v310_v51 = vlaneseq }
  0x51   : > { %1228 = vsyncadd (%p1501_p9), [#allocation6], 4294965248  ;;  %368 = vmatprep.mubr.bf16.mxu0 %v1255_v0  ;;  %v912_v3 = vcombine.high %v307_v1, %v307_v1  ;;  %v911_v4 = vcombine.low %v307_v1, %v307_v1  ;;  %v1057_v5 = vld [vmem:[#allocation2 + $0x4] ss:$8 sps:$4 sm:$0xff]   ;;  %v1059_v6 = vld [vmem:[#allocation2] ss:$8 sps:$4 sm:$0xff]  }
  0x52   : > { %s301_s16 = scalar_select %p300_p10, %s1318_s28, 1  ;;  %585 = vmatprep.subr.bf16.mxu1 %v1057_v5  ;;  %vm325_vm1 = vcmask 64512   ;;  %v1062_v10 = vld [vmem:[#allocation2 + $0x10] ss:$8 sps:$4 sm:$0xff]   ;;  %v1063_v11 = vld [vmem:[#allocation2 + $0x24] ss:$8 sps:$4 sm:$0xff]  }
  0x53   : > { %913 = vmatprep.subr.msk.bf16.mxu0 %vm329_vm0, %v912_v3  ;;  %v331_v8 = vsel %vm329_vm0, %v911_v4, 0  ;;  %586 = vmatpush1.bf16.msra.mxu1 %v1059_v6  ;;  %v1065_v12 = vld [vmem:[#allocation2 + $0x20] ss:$8 sps:$4 sm:$0xff]   ;;  %v1066_v13 = vld [vmem:[#allocation2 + $0x34] ss:$8 sps:$4 sm:$0xff]   ;;  %v311_v52 = vshrl.u32 %v310_v51, 7 }
  0x54   : > { %s910_s13 = sshll.u32 %s301_s16, 3  ;;  %337 = vmatpush1.bf16.msra.mxu0 %v331_v8  ;;  %587 = vmatprep.subr.bf16.mxu1 %v1060_v7  ;;  %v1068_v14 = vld [vmem:[#allocation2 + $0x30] ss:$8 sps:$4 sm:$0xff]   ;;  %v1069_v15 = vld [vmem:[#allocation2 + $0x44] ss:$8 sps:$4 sm:$0xff]   ;;  %s297_s10 = sand.u32 1, %s1239_s25  }
  0x55   : > { %s303_s21 = scalar_lea.vmem %s1481_s0, %s910_s13  ;;  %v1071_v16 = vld [vmem:[#allocation2 + $0x40] ss:$8 sps:$4 sm:$0xff]   ;;  %v1072_v17 = vld [vmem:[#allocation2 + $0x54] ss:$8 sps:$4 sm:$0xff]   ;;  %v1074_v18 = vld [vmem:[#allocation2 + $0x50] ss:$8 sps:$4 sm:$0xff]  }
  0x56   : > { %v305_v2 = vld [vmem:[%s303_s21] sm:$0xff]  ;;  %v1078_v21 = vld [vmem:[#allocation2 + $0x74] ss:$8 sps:$4 sm:$0xff]   ;;  %v1080_v22 = vld [vmem:[#allocation2 + $0x70] ss:$8 sps:$4 sm:$0xff]   ;;  %v312_v53 = vsub.s32 0, %v311_v52 }
  0x57   : > { %v306_v9 = vpack.c.bf16 %v305_v2, %v305_v2  ;;  %588 = vmatpush1.bf16.msra.mxu1 %v1062_v10  ;;  %v1075_v19 = vld [vmem:[#allocation2 + $0x64] ss:$8 sps:$4 sm:$0xff]   ;;  %v1077_v20 = vld [vmem:[#allocation2 + $0x60] ss:$8 sps:$4 sm:$0xff]   ;;  %v1084_v25 = vld [vmem:[#allocation2 + $0x94] ss:$8 sps:$4 sm:$0xff]  }
  0x58   : > { %589 = vmatprep.subr.bf16.mxu1 %v1063_v11  ;;  %v1081_v23 = vld [vmem:[#allocation2 + $0x84] ss:$8 sps:$4 sm:$0xff]   ;;  %v1083_v24 = vld [vmem:[#allocation2 + $0x80] ss:$8 sps:$4 sm:$0xff]   ;;  %v1086_v26 = vld [vmem:[#allocation2 + $0x90] ss:$8 sps:$4 sm:$0xff]  }
  0x59   : > { %914 = vmatmul.mubr.msk.bf16.vlgmr.msra.gmra.mrb[0].mxu0 %vm325_vm1, %v306_v9  ;;  %v1087_v27 = vld [vmem:[#allocation2 + $0xa4] ss:$8 sps:$4 sm:$0xff]   ;;  %v1089_v28 = vld [vmem:[#allocation2 + $0xa0] ss:$8 sps:$4 sm:$0xff]   ;;  %v1090_v29 = vld [vmem:[#allocation2 + $0xb4] ss:$8 sps:$4 sm:$0xff]  }
  0x5a   : > { %v1092_v30 = vld [vmem:[#allocation2 + $0xb0] ss:$8 sps:$4 sm:$0xff]   ;;  %v1093_v31 = vld [vmem:[#allocation2 + $0xc4] ss:$8 sps:$4 sm:$0xff]   ;;  %v1095_v32 = vld [vmem:[#allocation2 + $0xc0] ss:$8 sps:$4 sm:$0xff]  }
  0x5b   : > { %590 = vmatpush1.bf16.msra.mxu1 %v1065_v12  ;;  %v1096_v33 = vld [vmem:[#allocation2 + $0xd4] ss:$8 sps:$4 sm:$0xff]   ;;  %v1098_v34 = vld [vmem:[#allocation2 + $0xd0] ss:$8 sps:$4 sm:$0xff]   ;;  %v1099_v35 = vld [vmem:[#allocation2 + $0xe4] ss:$8 sps:$4 sm:$0xff]  }
  0x5c   : > { %591 = vmatprep.subr.bf16.mxu1 %v1066_v13  ;;  %v1101_v36 = vld [vmem:[#allocation2 + $0xe0] ss:$8 sps:$4 sm:$0xff]   ;;  %v1102_v37 = vld [vmem:[#allocation2 + $0xf4] ss:$8 sps:$4 sm:$0xff]   ;;  %v1104_v38 = vld [vmem:[#allocation2 + $0xf0] ss:$8 sps:$4 sm:$0xff]  }
  0x5d   : > { %v1105_v39 = vld [vmem:[#allocation5 + $0x40] sm:$0xff]   ;;  %v1107_v41 = vld [vmem:[#allocation5 + $0x48] sm:$0xff]   ;;  %v1109_v43 = vld [vmem:[#allocation5 + $0x50] sm:$0xff]   ;;  %v316_v55 = vsub.s32 1, %v311_v52  ;;  %s909_s14 = sshll.u32 %s297_s10, 3  ;;  %s965_s16 = sshll.u32 %s1318_s28, 7 }
  0x5e   : > { %v1106_v40 = vld [vmem:[#allocation5] sm:$0xff]   ;;  %968 = vmatprep.subr.bf16.mxu0 %v1105_v39  ;;  %v1108_v42 = vld [vmem:[#allocation5 + $0x8] sm:$0xff]   ;;  %v1110_v44 = vld [vmem:[#allocation5 + $0x10] sm:$0xff]   ;;  %s299_s13 = scalar_lea.vmem [#allocation7], %s909_s14  ;;  %s1439_s22 = scalar_lea.hbm %s1488_s7, %s965_s16 }
  0x5f   : > { %592 = vmatpush1.bf16.msra.mxu1 %v1068_v14  ;;  %969 = vmatpush3.bf16.msra.mxu0 %v1106_v40  ;;  %v1111_v45 = vld [vmem:[#allocation5 + $0x58] sm:$0xff]   ;;  %v1113_v47 = vld [vmem:[#allocation5 + $0x60] sm:$0xff]   ;;  %v1115_v49 = vld [vmem:[#allocation5 + $0x68] sm:$0xff]   ;;  %s820_s18 = sshll.u32 %s299_s13, 4  ;;  %s807_s23 = scalar_lea.sflag [#allocation4], %s297_s10  ;;  %s1441_s18 = int_to_ptr.vmem [resolvable:$true] %s820_s18 }
  0x60   : > { %593 = vmatprep.subr.bf16.mxu1 %v1069_v15  ;;  %970 = vmatprep.subr.bf16.mxu0 %v1107_v41  ;;  %v1112_v46 = vld [vmem:[#allocation5 + $0x18] sm:$0xff]   ;;  %v1114_v48 = vld [vmem:[#allocation5 + $0x20] sm:$0xff]   ;;  %v1116_v50 = vld [vmem:[#allocation5 + $0x28] sm:$0xff]   ;;  %s1177_s29 = scalar_lea.vmem %s1441_s18, 128  ;;  %p1502_p1 = scmp.ne.s32.totalorder %s1493_s11, 0 }
  0x61   : > { %v308_v54 = vld [vmem:[%s1483_s2] sm:$0x3]  ;;  %v1117_v4 = vld [vmem:[#allocation5 + $0x70] sm:$0xff]   ;;  %v1119_v6 = vld [vmem:[#allocation5 + $0x78] sm:$0xff]   ;;  %p1178_p12 = scmp.ne.s32.totalorder %s1441_s18, %s1177_s29  ;;  %s1256_s28 = smov [#allocation7]  }
  0x62   : > { %v313_v56 = vrot.slane %v308_v54, %v312_v53  ;;  %v317_v57 = vrot.slane %v308_v54, %v316_v55  ;;  %v1118_v5 = vld [vmem:[#allocation5 + $0x30] sm:$0xff]   ;;  %v1120_v7 = vld [vmem:[#allocation5 + $0x38] sm:$0xff]   ;;  %v413_v8 = vld [vmem:[%s1485_s4] sm:$0x3]  ;;  %s1181_s8 = sshll.u32 %s1256_s28, 4  ;;  %s1182_s8 = int_to_ptr.vmem [resolvable:$false] %s1181_s8 }
  0x63   : > { %594 = vmatpush1.bf16.msra.mxu1 %v1071_v16  ;;  %971 = vmatpush3.bf16.msra.mxu0 %v1108_v42  ;;  %v418_v9 = vrot.slane %v413_v8, %v312_v53  ;;  %v422_v10 = vrot.slane %v413_v8, %v316_v55  ;;  %p1179_p2 = pnand %p1178_p12, %p1502_p1  ;;  %s1183_s9 = scalar_lea.vmem %s1182_s8, 256 }
  0x64   : > { %595 = vmatprep.subr.bf16.mxu1 %v1072_v17  ;;  %972 = vmatprep.subr.bf16.mxu0 %v1109_v43  ;;  %p1184_p4 = scmp.lt.s32.totalorder %s1441_s18, %s1182_s8  ;;  %p1185_p7 = scmp.lt.s32.totalorder %s1183_s9, %s1177_s29 }
  0x65   : > { %p1180_p3 = pneg %p1179_p2 }
  0x66   : > { %p1186_p8 = por %p1185_p7, %p1184_p4 }
  0x67   : > { %596 = vmatpush1.bf16.msra.mxu1 %v1074_v18  ;;  %973 = vmatpush3.bf16.msra.mxu0 %v1110_v44 }
  0x68   : > { %597 = vmatprep.subr.bf16.mxu1 %v1075_v19  ;;  %974 = vmatprep.subr.bf16.mxu0 %v1111_v45  ;;  %p1187_p11 = pnand %p1186_p8, %p1180_p3 }
  0x6b   : > { %598 = vmatpush1.bf16.msra.mxu1 %v1077_v20  ;;  %975 = vmatpush3.bf16.msra.mxu0 %v1112_v46 }
  0x6c   : > { %599 = vmatprep.subr.bf16.mxu1 %v1078_v21  ;;  %976 = vmatprep.subr.bf16.mxu0 %v1113_v47 }
  0x6f   : > { %600 = vmatpush1.bf16.msra.mxu1 %v1080_v22  ;;  %977 = vmatpush3.bf16.msra.mxu0 %v1114_v48  ;;  %v947_v22 = vld [vmem:[%s1487_s6] ss:$0 sm:$0xff] }
  0x70   : > { %601 = vmatprep.subr.bf16.mxu1 %v1081_v23  ;;  %978 = vmatprep.subr.bf16.mxu0 %v1115_v49 }
  0x73   : > { %602 = vmatpush1.bf16.msra.mxu1 %v1083_v24  ;;  %979 = vmatpush3.bf16.msra.mxu0 %v1116_v50 }
  0x74   : > { %603 = vmatprep.subr.bf16.mxu1 %v1084_v25  ;;  %980 = vmatprep.subr.bf16.mxu0 %v1117_v4 }
  0x77   : > { %604 = vmatpush1.bf16.msra.mxu1 %v1086_v26  ;;  %981 = vmatpush3.bf16.msra.mxu0 %v1118_v5 }
  0x78   : > { %605 = vmatprep.subr.bf16.mxu1 %v1087_v27  ;;  %982 = vmatprep.subr.bf16.mxu0 %v1119_v6 }
  0x7b   : > { %606 = vmatpush1.bf16.msra.mxu1 %v1089_v28  ;;  %983 = vmatpush3.bf16.msra.mxu0 %v1120_v7 }
  0x7c   : > { %607 = vmatprep.subr.bf16.mxu1 %v1090_v29 }
  0x7f   : > { %608 = vmatpush1.bf16.msra.mxu1 %v1092_v30 }
  0x80   : > { %609 = vmatprep.subr.bf16.mxu1 %v1093_v31 }
  0x83   : > { %610 = vmatpush1.bf16.msra.mxu1 %v1095_v32 }
  0x84   : > { %611 = vmatprep.subr.bf16.mxu1 %v1096_v33 }
  0x87   : > { %612 = vmatpush1.bf16.msra.mxu1 %v1098_v34 }
  0x88   : > { %613 = vmatprep.subr.bf16.mxu1 %v1099_v35 }
  0x8b   : > { %614 = vmatpush1.bf16.msra.mxu1 %v1101_v36 }
  0x8c   : > { %615 = vmatprep.subr.bf16.mxu1 %v1102_v37 }
  0x8f   : > { %616 = vmatpush1.bf16.msra.mxu1 %v1104_v38 }
 0x12c   : > { %v370_v58 = vpop.f32.mrb[0].mxu0 }
 0x12d   : > { %v371_v59 = vadd.f32 %v370_v58, %v313_v56  ;;  %v372_v60 = vpop.f32.mrb[1].mxu0 }
 0x12e   : > { %v373_v61 = vadd.f32 %v372_v60, %v317_v57  ;;  %v374_v62 = vpop.f32.mrb[2].mxu0 }
 0x12f   : > { %v377_v63 = vmax.f32 %v371_v59, 0.0  ;;  %v375_v0 = vpop.f32.mrb[3].mxu0 }
 0x130   : > { %v378_v1 = vmax.f32 %v373_v61, 0.0 }
 0x131   : > { %v379_v3 = vpack.c.bf16 %v377_v63, %v377_v63 }
 0x132   : > { %v380_v2 = vpack.c.bf16 %v378_v1, %v378_v1 }
 0x134   : > { %617 = vmatprep.mubr.bf16.mxu1 %v380_v2 }
 0x135   : > { %618 = vmatmul.mubr.bf16.vlgmr.msra.gmra.mrb[0].mxu1 %v379_v3 }
 0x208   : > { %v619_v11 = vpop.f32.mrb[0].mxu1 }
 0x209   : > { %v620_v12 = vadd.f32 %v619_v11, %v418_v9  ;;  %v621_v13 = vpop.f32.mrb[1].mxu1 }
 0x20a   : > { %v622_v14 = vadd.f32 %v621_v13, %v422_v10  ;;  %v623_v15 = vpop.f32.mrb[2].mxu1 }
 0x20b   : > { %v626_v16 = vmax.f32 %v620_v12, 0.0  ;;  %v624_v17 = vpop.f32.mrb[3].mxu1 }
 0x20c   : > { %v627_v18 = vmax.f32 %v622_v14, 0.0 }
 0x20d   : > { %v628_v20 = vpack.c.bf16 %v626_v16, %v626_v16 }
 0x20e   : > { %v629_v19 = vpack.c.bf16 %v627_v18, %v627_v18 }
 0x210   : > { %797 = vmatprep.mubr.bf16.mxu0 %v629_v19 }
 0x211   : > { %798 = vmatmul.mubr.bf16.vlgmr.msra.gmra.mrb[4].mxu0 %v628_v20 }
 0x2e4   : > { %v984_v21 = vpop.f32.mrb[4].mxu0 }
 0x2e5   : > { %v985_v23 = vpop.f32.mrb[5].mxu0 }
 0x2e6   : > { %v986_v24 = vadd.f32 %v985_v23, %v984_v21  ;;  %v987_v25 = vpop.f32.mrb[6].mxu0 }
 0x2e7   : > { %v988_v26 = vpop.f32.mrb[7].mxu0 }
 0x2e8   : > { %v800_v27 = vadd.f32 %v986_v24, %v947_v22 }
 0x2ea   : > { %805 = vst [vmem:[%s299_s13] sm:$0xff] %v800_v27 }
 0x2eb   : > { %1190 = shalt.err (!%p1187_p11)
}
 0x2ec   : > { %s1191_s15 = scalar_lea.hbm %s1439_s22, 128  ;;  %s1195_s17 = scalar_lea.hbm %s1488_s7, 256 }
 0x2ed   : > { %p1192_p13 = scmp.ne.s32.totalorder %s1439_s22, %s1191_s15  ;;  %p1196_p6 = scmp.lt.u32.totalorder %s1439_s22, %s1488_s7 }
 0x2ee   : > { %p1197_p9 = scmp.lt.u32.totalorder %s1195_s17, %s1191_s15  ;;  %p1199_p12 = scmp.lt.u32.totalorder %s1191_s15, %s1439_s22 }
 0x2ef   : > { %p1193_p0 = pnand %p1192_p13, %p1502_p1 }
 0x2f0   : > { %p1198_p10 = por %p1197_p9, %p1196_p6 }
 0x2f1   : > { %p1194_p5 = pneg %p1193_p0 }
 0x2f2   : > { %p1200_p2 = por %p1199_p12, %p1198_p10 }
 0x2f4   : > { %p1201_p3 = pnand %p1200_p2, %p1194_p5 }
 0x2f6   : > { %1204 = shalt.err (!%p1201_p3)
}
 0x2f7   : > { %998 = dma.vmem_to_hbm [thread:$0]  (%p1502_p1), %s1441_s18, 128, %s1439_s22, %s807_s23  }
 0x2f8 PF: > { %p1015_p4 = scmp.ge.s32.totalorder %s1247_s27, 2  ;;  %s832_s13 = sand.u32 1, %s1235_s24  }
 0x2f9   : > { %p1503_p7 = scmp.ne.s32.totalorder %s1494_s12, 0  ;;  %s833_s20 = scalar_lea.sflag [#allocation4], %s832_s13 }
 0x2fb   : > { %p1008_p8 = pnand %p1015_p4, %p1503_p7 }
 0x2fd   : > { %1230 = dma.done.wait (!%p1008_p8), %s833_s20, 128  }
 0x2fe   : > { %1232 = vsyncadd (!%p1008_p8), %s833_s20, 4294967168  ;;  %s1504_s21 = sld [smem:[#allocation11_spill]]  ;;  %p19_p11 = scmp.ge.s32.totalorder %s1322_s30, 4  }
 0x2ff   : > { %s1505_s24 = smov %s1239_s25  ;;  %s1506_s25 = smov %s1243_s26 }
 0x300   : > { %s1508_s27 = smov %s1322_s30  ;;  %21 = sbr.rel (!%p19_p11) target bundleno = 5 (0x5), region = 92 }
 0x304   : > { %s1507_s26 = smov %s1504_s21 }
 0x307   :  { %838 = vsyncpa [#allocation3], 1 }
 0x308   :  { %840 = vsyncpa [#allocation3 + $0x1], 1 }
 0x309   :  { %841 = vsyncpa [#allocation6], 1 }
 0x30a   :  { %842 = vsyncpa [#allocation4], 1 }
 0x30b   :  { %844 = vsyncpa [#allocation4 + $0x1], 1 }

</bundles_post_ra>
